<compile_context>
chip_gen: v5e
topology: v5e:2x2
jax: 0.10.0
libtpu: 0.0.40
codegen_flags: <defaults>
</compile_context>

<pallas_src>
import math

import jax
import jax.numpy as jnp
from jax.experimental import pallas as pl
from jax.experimental.pallas import tpu as pltpu


def _round_up(x, m):
    return (x + m - 1) // m * m


def actor_kernel(x_ref, w1_ref, b1_ref, w2_ref, b2_ref, w3_ref, b3_ref, o_ref):
    x = x_ref[...]
    if x.dtype != jnp.bfloat16:          # no-op when the producer supplies bf16
        x = x.astype(jnp.bfloat16)

    # ---- l1 + relu ----  bf16 operands, f32 accumulate -> full-rate MXU
    h1 = jnp.dot(x, w1_ref[...], preferred_element_type=jnp.float32)
    h1 = jnp.maximum(h1 + b1_ref[...], 0.0)

    # ---- l2 + relu ----
    h2 = jnp.dot(h1.astype(jnp.bfloat16), w2_ref[...],
                 preferred_element_type=jnp.float32)
    h2 = jnp.maximum(h2 + b2_ref[...], 0.0)

    # ---- dropout ----  identity in eval mode (see TODO in header)

    # ---- l3 + sigmoid ----  narrow (action_dim-wide) output, stored bf16
    logits = jnp.dot(h2.astype(jnp.bfloat16), w3_ref[...],
                     preferred_element_type=jnp.float32)
    logits = logits + b3_ref[...]
    act = 0.5 * (jnp.tanh(0.5 * logits) + 1.0)   # sigmoid; tanh runs on the EUP
    o_ref[...] = act.astype(o_ref.dtype)


def actor_forward(state, params, *, block_batch=512, training=False):
    """state: [B, state_dim] (bf16 preferred).  params: bf16 [in,out] weights, f32 [1,out] biases.

    Returns bf16 actions of shape [B, action_dim]."""
    if training:
        # TODO(synk): training-mode dropout not implemented in the kernel.
        raise NotImplementedError("actor_forward kernel is inference-only (dropout = identity)")

    B, state_dim = state.shape
    w1, b1 = params["w1"], params["b1"]
    w2, b2 = params["w2"], params["b2"]
    w3, b3 = params["w3"], params["b3"]
    action_dim = w3.shape[1]

    # Batch tile: multiple of 16 (bf16 sublane packing); sized so the last tile
    # isn't mostly padding; >= 2 grid steps when the batch allows (v7x: keeps
    # both TensorCores busy via the "parallel" batch axis).
    min_tiles = 2 if B > 16 else 1
    n_tiles = max(pl.cdiv(B, block_batch), min_tiles)
    TB = min(_round_up(pl.cdiv(B, n_tiles), 16), _round_up(block_batch, 16))
    B_pad = _round_up(B, TB)
    state_p = jnp.pad(state, ((0, B_pad - B), (0, 0))) if B_pad != B else state
    grid = (B_pad // TB,)

    # Weights/biases: constant block index -> loaded once, resident in VMEM.
    resident = lambda shape: pl.BlockSpec(shape, lambda i: (0, 0))

    out = pl.pallas_call(
        actor_kernel,
        out_shape=jax.ShapeDtypeStruct((B_pad, action_dim), jnp.bfloat16),
        grid=grid,
        in_specs=[
            pl.BlockSpec((TB, state_dim), lambda i: (i, 0)),   # state tile
            resident(w1.shape), resident(b1.shape),
            resident(w2.shape), resident(b2.shape),
            resident(w3.shape), resident(b3.shape),
        ],
        out_specs=pl.BlockSpec((TB, action_dim), lambda i: (i, 0)),
        compiler_params=pltpu.CompilerParams(
            dimension_semantics=("parallel",)),
    )(state_p, w1, b1, w2, b2, w3, b3)

    # Only a (tiny) row slice when B isn't a tile multiple; no column slice.
    return out if B_pad == B else out[:B]


def init_actor_params(key, state_dim, action_dim, hidden=256):
    """PyTorch nn.Linear-style init (U(-1/sqrt(fan_in), +1/sqrt(fan_in))).

    Weights are stored pre-transposed as [in, out] and cast to bf16 (halves
    HBM/VMEM weight bytes; matmuls accumulate in f32). Biases stay f32.
    """
    keys = jax.random.split(key, 6)

    def linear(kw, kb, fan_in, fan_out):
        bound = 1.0 / math.sqrt(fan_in)
        w = jax.random.uniform(kw, (fan_in, fan_out), jnp.float32, -bound, bound)
        b = jax.random.uniform(kb, (1, fan_out), jnp.float32, -bound, bound)
        return w.astype(jnp.bfloat16), b

    w1, b1 = linear(keys[0], keys[1], state_dim, hidden)
    w2, b2 = linear(keys[2], keys[3], hidden, hidden)
    w3, b3 = linear(keys[4], keys[5], hidden, action_dim)
    return {"w1": w1, "b1": b1, "w2": w2, "b2": b2, "w3": w3, "b3": b3}


def actor_forward_ref(state, p):
    """Pure-JAX reference mimicking the kernel's bf16-operand / f32-accumulate math."""
    bf = lambda x: x.astype(jnp.bfloat16).astype(jnp.float32)
    w1 = p["w1"].astype(jnp.float32)
    w2 = p["w2"].astype(jnp.float32)
    w3 = p["w3"].astype(jnp.float32)
    h = jnp.maximum(bf(state) @ w1 + p["b1"], 0.0)
    h = jnp.maximum(bf(h) @ w2 + p["b2"], 0.0)
    return jax.nn.sigmoid(bf(h) @ w3 + p["b3"])


if __name__ == "__main__":
    key = jax.random.PRNGKey(0)
    k_param, k_state = jax.random.split(key)

    batch, state_dim, action_dim = 4, 16, 8
    params = init_actor_params(k_param, state_dim, action_dim)
    # Producer emits bf16 state directly (no wrapper cast needed).
    state = jax.random.normal(k_state, (batch, state_dim), jnp.float32).astype(jnp.bfloat16)

    out = jax.block_until_ready(actor_forward(state, params))
    ref = jax.block_until_ready(actor_forward_ref(state, params))

    assert out.shape == (batch, action_dim), out.shape
    assert out.dtype == jnp.bfloat16, out.dtype
    # bf16 output quantization (~4e-3 near 1.0) dominates the tolerance.
    assert jnp.allclose(out.astype(jnp.float32), ref, atol=1e-2, rtol=1e-2), "mismatch vs reference"

    print("KERNEL_OK")
</pallas_src>

<mosaic_0001>
module attributes {stable_mosaic.version = 11 : i64} {
  func.func @actor_kernel(%arg0: i32, %arg1: memref<16x16xbf16, #tpu.memory_space<vmem>>, %arg2: memref<16x256xbf16, #tpu.memory_space<vmem>>, %arg3: memref<1x256xf32, #tpu.memory_space<vmem>>, %arg4: memref<256x256xbf16, #tpu.memory_space<vmem>>, %arg5: memref<1x256xf32, #tpu.memory_space<vmem>>, %arg6: memref<256x8xbf16, #tpu.memory_space<vmem>>, %arg7: memref<1x8xf32, #tpu.memory_space<vmem>>, %arg8: memref<16x8xbf16, #tpu.memory_space<vmem>>) attributes {dimension_semantics = [#tpu.dimension_semantics<parallel>], iteration_bounds = array<i64: 1>, scalar_prefetch = 0 : i64, scratch_operands = 0 : i64, tpu.core_type = #tpu.core_type<tc>, window_params = [{transform_indices = @transform_0, window_bounds = array<i64: 16, 16>}, {pipeline_mode = #tpu.pipeline_mode<synchronous>, transform_indices = @transform_1, window_bounds = array<i64: 16, 256>}, {pipeline_mode = #tpu.pipeline_mode<synchronous>, transform_indices = @transform_2, window_bounds = array<i64: 1, 256>}, {pipeline_mode = #tpu.pipeline_mode<synchronous>, transform_indices = @transform_3, window_bounds = array<i64: 256, 256>}, {pipeline_mode = #tpu.pipeline_mode<synchronous>, transform_indices = @transform_4, window_bounds = array<i64: 1, 256>}, {pipeline_mode = #tpu.pipeline_mode<synchronous>, transform_indices = @transform_5, window_bounds = array<i64: 256, 8>}, {pipeline_mode = #tpu.pipeline_mode<synchronous>, transform_indices = @transform_6, window_bounds = array<i64: 1, 8>}, {transform_indices = @transform_7, window_bounds = array<i64: 16, 8>}]} {
    %c0 = arith.constant 0 : index
    %c0_0 = arith.constant 0 : index
    %0 = vector.load %arg1[%c0, %c0_0] : memref<16x16xbf16, #tpu.memory_space<vmem>>, vector<16x16xbf16>
    %c0_1 = arith.constant 0 : index
    %c0_2 = arith.constant 0 : index
    %1 = vector.load %arg2[%c0_1, %c0_2] : memref<16x256xbf16, #tpu.memory_space<vmem>>, vector<16x256xbf16>
    %cst = arith.constant dense<0.000000e+00> : vector<16x256xf32>
    %2 = tpu.matmul %0, %1, %cst {dimension_numbers = #tpu.dot_dimension_numbers<[1], [0], [0], [1], [0, 0, 1, 1], [], []>} : vector<16x16xbf16>, vector<16x256xbf16>, vector<16x256xf32> -> vector<16x256xf32>
    %c0_3 = arith.constant 0 : index
    %c0_4 = arith.constant 0 : index
    %3 = vector.load %arg3[%c0_3, %c0_4] : memref<1x256xf32, #tpu.memory_space<vmem>>, vector<1x256xf32>
    %4 = vector.broadcast %3 : vector<1x256xf32> to vector<16x256xf32>
    %5 = arith.addf %2, %4 : vector<16x256xf32>
    %cst_5 = arith.constant 0.000000e+00 : f32
    %6 = vector.broadcast %cst_5 : f32 to vector<16x256xf32>
    %7 = arith.maximumf %5, %6 : vector<16x256xf32>
    %8 = arith.truncf %7 : vector<16x256xf32> to vector<16x256xbf16>
    %c0_6 = arith.constant 0 : index
    %c0_7 = arith.constant 0 : index
    %9 = vector.load %arg4[%c0_6, %c0_7] : memref<256x256xbf16, #tpu.memory_space<vmem>>, vector<256x256xbf16>
    %cst_8 = arith.constant dense<0.000000e+00> : vector<16x256xf32>
    %10 = tpu.matmul %8, %9, %cst_8 {dimension_numbers = #tpu.dot_dimension_numbers<[1], [0], [0], [1], [0, 0, 1, 1], [], []>} : vector<16x256xbf16>, vector<256x256xbf16>, vector<16x256xf32> -> vector<16x256xf32>
    %c0_9 = arith.constant 0 : index
    %c0_10 = arith.constant 0 : index
    %11 = vector.load %arg5[%c0_9, %c0_10] : memref<1x256xf32, #tpu.memory_space<vmem>>, vector<1x256xf32>
    %12 = vector.broadcast %11 : vector<1x256xf32> to vector<16x256xf32>
    %13 = arith.addf %10, %12 : vector<16x256xf32>
    %cst_11 = arith.constant 0.000000e+00 : f32
    %14 = vector.broadcast %cst_11 : f32 to vector<16x256xf32>
    %15 = arith.maximumf %13, %14 : vector<16x256xf32>
    %16 = arith.truncf %15 : vector<16x256xf32> to vector<16x256xbf16>
    %c0_12 = arith.constant 0 : index
    %c0_13 = arith.constant 0 : index
    %17 = vector.load %arg6[%c0_12, %c0_13] : memref<256x8xbf16, #tpu.memory_space<vmem>>, vector<256x8xbf16>
    %cst_14 = arith.constant dense<0.000000e+00> : vector<16x8xf32>
    %18 = tpu.matmul %16, %17, %cst_14 {dimension_numbers = #tpu.dot_dimension_numbers<[1], [0], [0], [1], [0, 0, 1, 1], [], []>} : vector<16x256xbf16>, vector<256x8xbf16>, vector<16x8xf32> -> vector<16x8xf32>
    %c0_15 = arith.constant 0 : index
    %c0_16 = arith.constant 0 : index
    %19 = vector.load %arg7[%c0_15, %c0_16] : memref<1x8xf32, #tpu.memory_space<vmem>>, vector<1x8xf32>
    %20 = vector.broadcast %19 : vector<1x8xf32> to vector<16x8xf32>
    %21 = arith.addf %18, %20 : vector<16x8xf32>
    %cst_17 = arith.constant 5.000000e-01 : f32
    %22 = vector.broadcast %cst_17 : f32 to vector<16x8xf32>
    %23 = arith.mulf %22, %21 : vector<16x8xf32>
    %24 = math.tanh %23 : vector<16x8xf32>
    %cst_18 = arith.constant 1.000000e+00 : f32
    %25 = vector.broadcast %cst_18 : f32 to vector<16x8xf32>
    %26 = arith.addf %24, %25 : vector<16x8xf32>
    %cst_19 = arith.constant 5.000000e-01 : f32
    %27 = vector.broadcast %cst_19 : f32 to vector<16x8xf32>
    %28 = arith.mulf %27, %26 : vector<16x8xf32>
    %29 = arith.truncf %28 : vector<16x8xf32> to vector<16x8xbf16>
    %c0_20 = arith.constant 0 : index
    %c0_21 = arith.constant 0 : index
    %30 = vector.load %arg8[%c0_20, %c0_21] : memref<16x8xbf16, #tpu.memory_space<vmem>>, vector<16x8xbf16>
    tpu.vector_store %arg8[%c0_20, %c0_21], %29 {strides = array<i32>} : memref<16x8xbf16, #tpu.memory_space<vmem>>, vector<16x8xbf16>,
    return
  }
  func.func @transform_0(%arg0: i32) -> (i32, i32) {
    %c0_i32 = arith.constant 0 : i32
    %c0_i32_0 = arith.constant 0 : i32
    return %arg0, %c0_i32 : i32, i32
  }
  func.func @transform_1(%arg0: i32) -> (i32, i32) {
    %c0_i32 = arith.constant 0 : i32
    %c0_i32_0 = arith.constant 0 : i32
    %c0_i32_1 = arith.constant 0 : i32
    return %c0_i32, %c0_i32_0 : i32, i32
  }
  func.func @transform_2(%arg0: i32) -> (i32, i32) {
    %c0_i32 = arith.constant 0 : i32
    %c0_i32_0 = arith.constant 0 : i32
    %c0_i32_1 = arith.constant 0 : i32
    return %c0_i32, %c0_i32_0 : i32, i32
  }
  func.func @transform_3(%arg0: i32) -> (i32, i32) {
    %c0_i32 = arith.constant 0 : i32
    %c0_i32_0 = arith.constant 0 : i32
    %c0_i32_1 = arith.constant 0 : i32
    return %c0_i32, %c0_i32_0 : i32, i32
  }
  func.func @transform_4(%arg0: i32) -> (i32, i32) {
    %c0_i32 = arith.constant 0 : i32
    %c0_i32_0 = arith.constant 0 : i32
    %c0_i32_1 = arith.constant 0 : i32
    return %c0_i32, %c0_i32_0 : i32, i32
  }
  func.func @transform_5(%arg0: i32) -> (i32, i32) {
    %c0_i32 = arith.constant 0 : i32
    %c0_i32_0 = arith.constant 0 : i32
    %c0_i32_1 = arith.constant 0 : i32
    return %c0_i32, %c0_i32_0 : i32, i32
  }
  func.func @transform_6(%arg0: i32) -> (i32, i32) {
    %c0_i32 = arith.constant 0 : i32
    %c0_i32_0 = arith.constant 0 : i32
    %c0_i32_1 = arith.constant 0 : i32
    return %c0_i32, %c0_i32_0 : i32, i32
  }
  func.func @transform_7(%arg0: i32) -> (i32, i32) {
    %c0_i32 = arith.constant 0 : i32
    %c0_i32_0 = arith.constant 0 : i32
    return %arg0, %c0_i32 : i32, i32
  }
}

</mosaic_0001>

<bundles_post_ra>
// kernel: tpu_custom_call.1
= control target key start
LH: loop header
LB: loop body
LE: loop exit
PB: predicated region body
PF: predicated region fallthrough
CT: control target
= control target key end

     0   :  { %12 = vsyncpa [#allocation3], 0  ;;  %s835_s27 = smov [#allocation2]   ;;  %s836_s29 = smov 128   ;;  %s961_s0 = inlined_call_operand.vmem [shape: bf16[16,16], index: 0, kind: input, shape index: {}]   ;;  %s962_s1 = inlined_call_operand.vmem [shape: bf16[16,256], index: 1, kind: input, shape index: {}]   ;;  %s963_s2 = inlined_call_operand.vmem [shape: f32[1,256], index: 2, kind: input, shape index: {}]   ;;  %s964_s3 = inlined_call_operand.hbm [shape: bf16[256,256], index: 3, kind: input, shape index: {}]   ;;  %s965_s4 = inlined_call_operand.vmem [shape: f32[1,256], index: 4, kind: input, shape index: {}]   ;;  %s966_s5 = inlined_call_operand.vmem [shape: bf16[256,8], index: 5, kind: input, shape index: {}]   ;;  %s967_s6 = inlined_call_operand.vmem [shape: f32[1,8], index: 6, kind: input, shape index: {}]   ;;  %s968_s7 = inlined_call_operand.vmem [shape: bf16[16,8], index: 7, kind: output, shape index: {}]  }
   0x1   :  { %s23_s26 = sshll.u32 %s964_s3, 4  ;;  %s25_s28 = sshll.u32 %s835_s27, 4  ;;  %s24_s26 = int_to_ptr.hbm [resolvable:$true] %s23_s26  ;;  %s26_s28 = int_to_ptr.vmem [resolvable:$true] %s25_s28 }
   0x2   :  { %s837_s30 = smov 8  }
   0x3   :  { %31 = dma.hbm_to_vmem [thread:$0]  %s24_s26, 4096, %s26_s28, [#allocation3], %s836_s29, %s836_s29, %s837_s30  }
   0x4   :  { %833 = dma.done.wait [#allocation3], 4096  }
   0x5   :  { %834 = vsyncadd [#allocation3], 4294963200  ;;  %v550_v0 = vld [vmem:[%s962_s1] sm:$0xf]  ;;  %v752_v1 = vld [vmem:[%s962_s1 + $0x4] sm:$0xf0] }
   0x6   :  { %v751_v2 = vld [vmem:[%s962_s1 + $0x4] sm:$0xf]  ;;  %v551_v3 = vor.u32 %v752_v1, %v550_v0  ;;  %v552_v4 = vld [vmem:[%s962_s1 + $0x8] sm:$0xf0]  ;;  %vm68_vm0 = vcmask 130048   ;;  %vm536_vm1 = vcmask 60416  }
   0x7   :  { %v750_v5 = vld [vmem:[%s961_s0] sm:$0xff]  ;;  %v616_v6 = vld [vmem:[#allocation2 + $0x70] sm:$0xf]  ;;  %v555_v7 = vor.u32 %v751_v2, %v552_v4  ;;  %v768_v8 = vld [vmem:[#allocation2 + $0x74] sm:$0xf0] }
   0x8   :  { %v680_v9 = vld [vmem:[#allocation2 + $0xf0] sm:$0xf]  ;;  %v784_v10 = vld [vmem:[#allocation2 + $0xf4] sm:$0xf0]  ;;  %79 = vmatpush.bf16.msra.mxu0 %v551_v3  ;;  %v617_v11 = vor.u32 %v768_v8, %v616_v6  ;;  %v767_v13 = vld [vmem:[#allocation2 + $0x74] sm:$0xf] }
   0x9   :  { %v681_v12 = vor.u32 %v784_v10, %v680_v9  ;;  %v618_v14 = vld [vmem:[#allocation2 + $0x78] sm:$0xf0]  ;;  %v783_v15 = vld [vmem:[#allocation2 + $0xf4] sm:$0xf]  ;;  %93 = vmatpush.bf16.msra.mxu1 %v555_v7  ;;  %v608_v18 = vld [vmem:[#allocation2 + $0x60] sm:$0xf] }
   0xa   :  { %v621_v16 = vor.u32 %v767_v13, %v618_v14  ;;  %v682_v17 = vld [vmem:[#allocation2 + $0xf8] sm:$0xf0]  ;;  %v766_v19 = vld [vmem:[#allocation2 + $0x64] sm:$0xf0]  ;;  %304 = vmatpush.bf16.msra.mxu2 %v617_v11  ;;  %v672_v22 = vld [vmem:[#allocation2 + $0xe0] sm:$0xf] }
   0xb   :  { %318 = vmatpush.bf16.msra.mxu3 %v681_v12  ;;  %v685_v20 = vor.u32 %v783_v15, %v682_v17  ;;  %v609_v21 = vor.u32 %v766_v19, %v608_v18  ;;  %v782_v23 = vld [vmem:[#allocation2 + $0xe4] sm:$0xf0]  ;;  %v765_v24 = vld [vmem:[#allocation2 + $0x64] sm:$0xf]  ;;  %556 = vmatmul.msk.bf16.vlgmr.msra.gmra.mxu0 %vm68_vm0, %v750_v5  ;;  %v610_v26 = vld [vmem:[#allocation2 + $0x68] sm:$0xf0] }
   0xc   :  { %v673_v25 = vor.u32 %v782_v23, %v672_v22  ;;  %v781_v27 = vld [vmem:[#allocation2 + $0xe4] sm:$0xf]  ;;  %v674_v28 = vld [vmem:[#allocation2 + $0xe8] sm:$0xf0]  ;;  %557 = vmatmul.msk.bf16.vlgmr.msra.gmra.mxu1 %vm68_vm0, %v750_v5  ;;  %332 = vmatpush.bf16.msrb.mxu0 %v621_v16  ;;  %v613_v29 = vor.u32 %v765_v24, %v610_v26  ;;  %v600_v30 = vld [vmem:[#allocation2 + $0x50] sm:$0xf] }
   0xd   :  { %v764_v31 = vld [vmem:[#allocation2 + $0x54] sm:$0xf0]  ;;  %v664_v32 = vld [vmem:[#allocation2 + $0xd0] sm:$0xf]  ;;  %346 = vmatpush.bf16.msrb.mxu1 %v685_v20  ;;  %v677_v33 = vor.u32 %v781_v27, %v674_v28  ;;  %v763_v35 = vld [vmem:[#allocation2 + $0x54] sm:$0xf] }
   0xe   :  { %v780_v34 = vld [vmem:[#allocation2 + $0xd4] sm:$0xf0]  ;;  %v602_v36 = vld [vmem:[#allocation2 + $0x58] sm:$0xf0]  ;;  %305 = vmatpush.bf16.msra.mxu2 %v609_v21  ;;  %v601_v37 = vor.u32 %v764_v31, %v600_v30  ;;  %v779_v39 = vld [vmem:[#allocation2 + $0xd4] sm:$0xf] }
   0xf   :  { %319 = vmatpush.bf16.msra.mxu3 %v673_v25  ;;  %v665_v38 = vor.u32 %v780_v34, %v664_v32  ;;  %v666_v40 = vld [vmem:[#allocation2 + $0xd8] sm:$0xf0]  ;;  %v592_v41 = vld [vmem:[#allocation2 + $0x40] sm:$0xf]  ;;  %v762_v42 = vld [vmem:[#allocation2 + $0x44] sm:$0xf0]  ;;  %v605_v45 = vor.u32 %v763_v35, %v602_v36 }
  0x10   :  { %v656_v43 = vld [vmem:[#allocation2 + $0xc0] sm:$0xf]  ;;  %v778_v44 = vld [vmem:[#allocation2 + $0xc4] sm:$0xf0]  ;;  %333 = vmatpush.bf16.msrb.mxu0 %v613_v29  ;;  %v669_v46 = vor.u32 %v779_v39, %v666_v40  ;;  %v761_v47 = vld [vmem:[#allocation2 + $0x44] sm:$0xf]  ;;  %v593_v49 = vor.u32 %v762_v42, %v592_v41 }
  0x11   :  { %347 = vmatpush.bf16.msrb.mxu1 %v677_v33  ;;  %v594_v48 = vld [vmem:[#allocation2 + $0x48] sm:$0xf0]  ;;  %v657_v50 = vor.u32 %v778_v44, %v656_v43  ;;  %v777_v51 = vld [vmem:[#allocation2 + $0xc4] sm:$0xf]  ;;  %v584_v55 = vld [vmem:[#allocation2 + $0x30] sm:$0xf] }
  0x12   :  { %306 = vmatpush.bf16.msra.mxu2 %v601_v37  ;;  %v658_v52 = vld [vmem:[#allocation2 + $0xc8] sm:$0xf0]  ;;  %v597_v53 = vor.u32 %v761_v47, %v594_v48  ;;  %v760_v56 = vld [vmem:[#allocation2 + $0x34] sm:$0xf0]  ;;  %v648_v57 = vld [vmem:[#allocation2 + $0xb0] sm:$0xf] }
  0x13   :  { %320 = vmatpush.bf16.msra.mxu3 %v665_v38  ;;  %v661_v54 = vor.u32 %v777_v51, %v658_v52  ;;  %v585_v58 = vor.u32 %v760_v56, %v584_v55  ;;  %v776_v59 = vld [vmem:[#allocation2 + $0xb4] sm:$0xf0]  ;;  %v759_v60 = vld [vmem:[#allocation2 + $0x34] sm:$0xf]  ;;  %v586_v61 = vld [vmem:[#allocation2 + $0x38] sm:$0xf0] }
  0x14   :  { %334 = vmatpush.bf16.msrb.mxu0 %v605_v45  ;;  %v649_v62 = vor.u32 %v776_v59, %v648_v57  ;;  %v589_v63 = vor.u32 %v759_v60, %v586_v61  ;;  %v775_v0 = vld [vmem:[#allocation2 + $0xb4] sm:$0xf]  ;;  %v650_v1 = vld [vmem:[#allocation2 + $0xb8] sm:$0xf0]  ;;  %v576_v3 = vld [vmem:[#allocation2 + $0x20] sm:$0xf] }
  0x15   :  { %348 = vmatpush.bf16.msrb.mxu1 %v669_v46  ;;  %v653_v2 = vor.u32 %v775_v0, %v650_v1  ;;  %v758_v4 = vld [vmem:[#allocation2 + $0x24] sm:$0xf0]  ;;  %v640_v6 = vld [vmem:[#allocation2 + $0xa0] sm:$0xf]  ;;  %v757_v8 = vld [vmem:[#allocation2 + $0x24] sm:$0xf] }
  0x16   :  { %307 = vmatpush.bf16.msra.mxu2 %v593_v49  ;;  %v577_v5 = vor.u32 %v758_v4, %v576_v3  ;;  %v774_v7 = vld [vmem:[#allocation2 + $0xa4] sm:$0xf0]  ;;  %v578_v10 = vld [vmem:[#allocation2 + $0x28] sm:$0xf0]  ;;  %v773_v11 = vld [vmem:[#allocation2 + $0xa4] sm:$0xf] }
  0x17   :  { %321 = vmatpush.bf16.msra.mxu3 %v657_v50  ;;  %v641_v9 = vor.u32 %v774_v7, %v640_v6  ;;  %v642_v12 = vld [vmem:[#allocation2 + $0xa8] sm:$0xf0]  ;;  %v581_v13 = vor.u32 %v757_v8, %v578_v10  ;;  %v568_v15 = vld [vmem:[#allocation2 + $0x10] sm:$0xf]  ;;  %v756_v16 = vld [vmem:[#allocation2 + $0x14] sm:$0xf0] }
  0x18   :  { %335 = vmatpush.bf16.msrb.mxu0 %v597_v53  ;;  %v645_v14 = vor.u32 %v773_v11, %v642_v12  ;;  %v632_v17 = vld [vmem:[#allocation2 + $0x90] sm:$0xf]  ;;  %v569_v18 = vor.u32 %v756_v16, %v568_v15  ;;  %v772_v19 = vld [vmem:[#allocation2 + $0x94] sm:$0xf0]  ;;  %v755_v20 = vld [vmem:[#allocation2 + $0x14] sm:$0xf] }
  0x19   :  { %349 = vmatpush.bf16.msrb.mxu1 %v661_v54  ;;  %v570_v21 = vld [vmem:[#allocation2 + $0x18] sm:$0xf0]  ;;  %v633_v22 = vor.u32 %v772_v19, %v632_v17  ;;  %v771_v24 = vld [vmem:[#allocation2 + $0x94] sm:$0xf]  ;;  %v560_v27 = vld [vmem:[#allocation2] sm:$0xf] }
  0x1a   :  { %308 = vmatpush.bf16.msra.mxu2 %v585_v58  ;;  %v573_v23 = vor.u32 %v755_v20, %v570_v21  ;;  %v634_v25 = vld [vmem:[#allocation2 + $0x98] sm:$0xf0]  ;;  %v754_v28 = vld [vmem:[#allocation2 + $0x4] sm:$0xf0]  ;;  %v624_v29 = vld [vmem:[#allocation2 + $0x80] sm:$0xf] }
  0x1b   :  { %322 = vmatpush.bf16.msra.mxu3 %v649_v62  ;;  %v637_v26 = vor.u32 %v771_v24, %v634_v25  ;;  %v561_v30 = vor.u32 %v754_v28, %v560_v27  ;;  %v770_v31 = vld [vmem:[#allocation2 + $0x84] sm:$0xf0]  ;;  %v753_v32 = vld [vmem:[#allocation2 + $0x4] sm:$0xf]  ;;  %v562_v33 = vld [vmem:[#allocation2 + $0x8] sm:$0xf0] }
  0x1c   :  { %336 = vmatpush.bf16.msrb.mxu0 %v589_v63  ;;  %v625_v34 = vor.u32 %v770_v31, %v624_v29  ;;  %v565_v35 = vor.u32 %v753_v32, %v562_v33  ;;  %v769_v36 = vld [vmem:[#allocation2 + $0x84] sm:$0xf]  ;;  %v626_v37 = vld [vmem:[#allocation2 + $0x88] sm:$0xf0]  ;;  %v800_v39 = vld [vmem:[%s966_s5 + $0x78] sm:$0xff] }
  0x1d   :  { %350 = vmatpush.bf16.msrb.mxu1 %v653_v2  ;;  %v629_v38 = vor.u32 %v769_v36, %v626_v37  ;;  %v792_v40 = vld [vmem:[%s966_s5 + $0x38] sm:$0xff]  ;;  %v799_v41 = vld [vmem:[%s966_s5 + $0x70] sm:$0xff]  ;;  %v798_v43 = vld [vmem:[%s966_s5 + $0x68] sm:$0xff] }
  0x1e   :  { %309 = vmatpush.bf16.msra.mxu2 %v577_v5  ;;  %v791_v42 = vld [vmem:[%s966_s5 + $0x30] sm:$0xff]  ;;  %v797_v44 = vld [vmem:[%s966_s5 + $0x60] sm:$0xff]  ;;  %v790_v62 = vld [vmem:[%s966_s5 + $0x28] sm:$0xff] }
  0x1f   :  { %323 = vmatpush.bf16.msra.mxu3 %v641_v9  ;;  %v47_v45 = vld [vmem:[%s963_s2] sm:$0x3]  ;;  %v796_v63 = vld [vmem:[%s966_s5 + $0x58] sm:$0xff]  ;;  %v795_v1 = vld [vmem:[%s966_s5 + $0x50] sm:$0xff] }
  0x20   :  { %337 = vmatpush.bf16.msrb.mxu0 %v581_v13  ;;  %v49_v48 = vperm.slane %v47_v45, 0  ;;  %v50_v49 = vperm.slane %v47_v45, 1  ;;  %v789_v0 = vld [vmem:[%s966_s5 + $0x20] sm:$0xff]  ;;  %v788_v2 = vld [vmem:[%s966_s5 + $0x18] sm:$0xff]  ;;  %v794_v3 = vld [vmem:[%s966_s5 + $0x48] sm:$0xff] }
  0x21   :  { %351 = vmatpush.bf16.msrb.mxu1 %v645_v14  ;;  %v787_v4 = vld [vmem:[%s966_s5 + $0x10] sm:$0xff]  ;;  %v793_v5 = vld [vmem:[%s966_s5 + $0x40] sm:$0xff]  ;;  %v786_v6 = vld [vmem:[%s966_s5 + $0x8] sm:$0xff] }
  0x22   :  { %310 = vmatpush.bf16.msra.mxu2 %v569_v18  ;;  %v785_v7 = vld [vmem:[%s966_s5] sm:$0xff] }
  0x23   :  { %324 = vmatpush.bf16.msra.mxu3 %v633_v22  ;;  %v138_v8 = vld [vmem:[%s965_s4] sm:$0x3] }
  0x24   :  { %338 = vmatpush.bf16.msrb.mxu0 %v573_v23  ;;  %v141_v10 = vperm.slane %v138_v8, 1  ;;  %v140_v14 = vperm.slane %v138_v8, 0  ;;  %v804_v33 = vld [vmem:[%s967_s6] ss:$0 sm:$0xff] }
  0x25   :  { %352 = vmatpush.bf16.msrb.mxu1 %v637_v26 }
  0x26   :  { %311 = vmatpush.bf16.msra.mxu2 %v561_v30 }
  0x27   :  { %325 = vmatpush.bf16.msra.mxu3 %v625_v34 }
  0x28   :  { %339 = vmatpush.bf16.msrb.mxu0 %v565_v35 }
  0x29   :  { %353 = vmatpush.bf16.msrb.mxu1 %v629_v38 }
  0x2a   :  { %498 = vmatpush.bf16.msrb.mxu2 %v792_v40 }
  0x2b   :  { %512 = vmatpush.bf16.msrb.mxu3 %v800_v39 }
  0x2e   :  { %499 = vmatpush.bf16.msrb.mxu2 %v791_v42 }
  0x2f   :  { %513 = vmatpush.bf16.msrb.mxu3 %v799_v41 }
  0x32   :  { %500 = vmatpush.bf16.msrb.mxu2 %v790_v62 }
  0x33   :  { %514 = vmatpush.bf16.msrb.mxu3 %v798_v43 }
  0x36   :  { %501 = vmatpush.bf16.msrb.mxu2 %v789_v0 }
  0x37   :  { %515 = vmatpush.bf16.msrb.mxu3 %v797_v44 }
  0x3a   :  { %502 = vmatpush.bf16.msrb.mxu2 %v788_v2 }
  0x3b   :  { %516 = vmatpush.bf16.msrb.mxu3 %v796_v63 }
  0x3e   :  { %503 = vmatpush.bf16.msrb.mxu2 %v787_v4 }
  0x3f   :  { %517 = vmatpush.bf16.msrb.mxu3 %v795_v1 }
  0x42   :  { %504 = vmatpush.bf16.msrb.mxu2 %v786_v6 }
  0x43   :  { %518 = vmatpush.bf16.msrb.mxu3 %v794_v3 }
  0x46   :  { %505 = vmatpush.bf16.msrb.mxu2 %v785_v7 }
  0x47   :  { %519 = vmatpush.bf16.msrb.mxu3 %v793_v5 }
  0x88   :  { %v81_v46 = vpop.f32.mrf.mxu0 }
  0x89   :  { %v95_v47 = vpop.f32.mrf.mxu1  ;;  %v82_v50 = vadd.f32 %v81_v46, %v49_v48 }
  0x8a   :  { %v96_v51 = vadd.f32 %v95_v47, %v50_v49 }
  0x8b   :  { %v100_v56 = vmax.f32 %v82_v50, 0.0 }
  0x8c   :  { %v101_v58 = vmax.f32 %v96_v51, 0.0 }
  0x90   :  { %v83_v52 = vpop.f32.mrf.mxu0 }
  0x91   :  { %v84_v53 = vadd.f32 %v83_v52, %v49_v48  ;;  %v97_v54 = vpop.f32.mrf.mxu1 }
  0x92   :  { %v98_v55 = vadd.f32 %v97_v54, %v50_v49 }
  0x93   :  { %v102_v57 = vmax.f32 %v84_v53, 0.0 }
  0x94   :  { %v103_v59 = vmax.f32 %v98_v55, 0.0 }
  0x95   :  { %v104_v60 = vpack.c.bf16 %v102_v57, %v100_v56 }
  0x96   :  { %v105_v61 = vpack.c.bf16 %v103_v59, %v101_v58 }
  0x97   :  { %312 = vmatmul.bf16.vlgmr.msra.gmra.mxu2 %v104_v60  ;;  %340 = vmatmul.bf16.vlgmr.msrb.gmra.mxu0 %v104_v60 }
  0x98   :  { %326 = vmatmul.bf16.vlgmr.msra.gmra.mxu3 %v105_v61  ;;  %354 = vmatmul.bf16.vlgmr.msrb.gmra.mxu1 %v105_v61 }
 0x114   :  { %v341_v9 = vpop.f32.mrf.mxu0 }
 0x115   :  { %v355_v11 = vpop.f32.mrf.mxu1  ;;  %v342_v12 = vadd.f32 %v341_v9, %v141_v10 }
 0x117   :  { %v356_v17 = vadd.f32 %v355_v11, %v342_v12 }
 0x119   :  { %v361_v22 = vmax.f32 %v356_v17, 0.0 }
 0x11a   :  { %v313_v13 = vpop.f32.mrf.mxu2 }
 0x11b   :  { %v327_v15 = vpop.f32.mrf.mxu3  ;;  %v314_v20 = vadd.f32 %v313_v13, %v140_v14 }
 0x11c   :  { %v343_v16 = vpop.f32.mrf.mxu0 }
 0x11d   :  { %v344_v18 = vadd.f32 %v343_v16, %v141_v10  ;;  %v357_v19 = vpop.f32.mrf.mxu1  ;;  %v328_v25 = vadd.f32 %v327_v15, %v314_v20 }
 0x11f   :  { %v358_v21 = vadd.f32 %v357_v19, %v344_v18  ;;  %v360_v30 = vmax.f32 %v328_v25, 0.0 }
 0x121   :  { %v363_v23 = vmax.f32 %v358_v21, 0.0 }
 0x122   :  { %v315_v24 = vpop.f32.mrf.mxu2 }
 0x123   :  { %v365_v26 = vpack.c.bf16 %v363_v23, %v361_v22  ;;  %v316_v27 = vadd.f32 %v315_v24, %v140_v14  ;;  %v329_v28 = vpop.f32.mrf.mxu3 }
 0x125   :  { %v330_v29 = vadd.f32 %v329_v28, %v316_v27  ;;  %520 = vmatmul.bf16.vlgmr.msrb.gmra.mxu3 %v365_v26 }
 0x127   :  { %v362_v31 = vmax.f32 %v330_v29, 0.0 }
 0x129   :  { %v364_v32 = vpack.c.bf16 %v362_v31, %v360_v30 }
 0x12b   :  { %506 = vmatmul.bf16.vlgmr.msrb.gmra.mxu2 %v364_v32 }
 0x1a8   :  { %v521_v34 = vpop.f32.mrf.mxu3 }
 0x1ae   :  { %v507_v35 = vpop.f32.mrf.mxu2 }
 0x1af   :  { %v508_v36 = vadd.f32 %v804_v33, %v507_v35 }
 0x1b0   :  { %v523_v41 = vpop.f32.mrf.mxu3 }
 0x1b1   :  { %v522_v37 = vadd.f32 %v521_v34, %v508_v36 }
 0x1b3   :  { %v526_v38 = vmul.f32 0.5, %v522_v37 }
 0x1b5   :  { %805 = vtanh.f32 %v526_v38 }
 0x1b6   :  { %v509_v39 = vpop.f32.mrf.mxu2 }
 0x1b7   :  { %v510_v40 = vadd.f32 %v804_v33, %v509_v39 }
 0x1b9   :  { %v524_v42 = vadd.f32 %v523_v41, %v510_v40 }
 0x1bb   :  { %v806_v43 = vpop.eup %805  ;;  %v527_v44 = vmul.f32 0.5, %v524_v42 }
 0x1bc   :  { %v530_v45 = vadd.f32 1.0, %v806_v43 }
 0x1bd   :  { %807 = vtanh.f32 %v527_v44 }
 0x1be   :  { %v532_v46 = vmul.f32 0.5, %v530_v45 }
 0x1c0   :  { %v534_v47 = vpack.c.bf16 %v532_v46, %v532_v46 }
 0x1c2   :  { %537 = vst.msk [vmem:[%s968_s7] sm:$0xf] %vm536_vm1, %v534_v47 }
 0x1c3   :  { %v808_v48 = vpop.eup %807 }
 0x1c4   :  { %v531_v49 = vadd.f32 1.0, %v808_v48 }
 0x1c6   :  { %v533_v50 = vmul.f32 0.5, %v531_v49 }
 0x1c8   :  { %v535_v51 = vpack.c.bf16 %v533_v50, %v533_v50 }
 0x1ca   :  { %538 = vst.msk [vmem:[%s968_s7 + $0x4] sm:$0xf] %vm536_vm1, %v535_v51 }
 0x1cb   :  { %543 = vsyncpa [#allocation3], 1 }

</bundles_post_ra>
